<compile_context>
chip_gen: v6e
topology: v6e:2x2x1
jax: 0.10.0
libtpu: 0.0.40
codegen_flags: <defaults>
</compile_context>

<pallas_src>
import jax
import jax.numpy as jnp
from jax import lax
from jax.experimental import pallas as pl
from jax.experimental.pallas import tpu as pltpu


def _fused_kernel(x_ref, y_ref, p_ref, w_ref, b_ref, o_ref):
    # x_ref/y_ref/o_ref: (tm, d_hid) tile of the batch
    # p_ref: (d_hid, d_hid) shared mm_param (aliased for both stages)
    # w_ref: (d_hid, d_hid) Linear weight in PyTorch (out, in) layout (aliased lin0/lin1)
    # b_ref: (1, d_hid) Linear bias (f32)
    cdt = p_ref.dtype            # MXU operand dtype (f32, or bf16 in use_bf16 mode)
    b = b_ref[...]               # (1, d_hid) f32, broadcasts over rows

    # Linear: h @ W.T without transposing W -> contract dim 1 of both operands.
    lin_dims = (((1,), (1,)), ((), ()))

    # ---- stage 0 ----
    h = jnp.dot(x_ref[...].astype(cdt), p_ref[...],
                preferred_element_type=jnp.float32)
    h = h + y_ref[...]
    h = lax.dot_general(h.astype(cdt), w_ref[...], dimension_numbers=lin_dims,
                        preferred_element_type=jnp.float32) + b
    h = jnp.maximum(h, 0.0)

    # ---- pipe_split(): no-op for single-device forward semantics ----
    # TODO(synk): pipe_split() is a pipeline-parallel annotation; no compute to translate.

    # ---- stage 1 (parameters aliased to stage 0's) ----
    h = jnp.dot(h.astype(cdt), p_ref[...],
                preferred_element_type=jnp.float32)
    h = lax.dot_general(h.astype(cdt), w_ref[...], dimension_numbers=lin_dims,
                        preferred_element_type=jnp.float32) + b
    h = jnp.maximum(h, 0.0)

    o_ref[...] = h.astype(o_ref.dtype)


def _pick_tm(batch):
    # Prefer a grid of >= 2 decent-sized tiles (feeds both v7x TensorCores);
    # otherwise take the largest power-of-two tile that divides the batch.
    if batch >= 256 and batch % 128 == 0:
        return 128
    for cand in (256, 128, 64, 32, 16, 8):
        if batch % cand == 0:
            return cand
    return batch  # tiny/odd batch: one tile covering the full batch


def model_with_param_alias(x, y, mm_param, lin_w, lin_b, *, tm=None, use_bf16=False):
    """Fused forward of ModelWithParamAlias.

    x, y:      (batch, d_hid) float32
    mm_param:  (d_hid, d_hid) float32   -- mm_param0 == mm_param1 (aliased)
    lin_w:     (d_hid, d_hid) float32   -- lin0.weight == lin1.weight (aliased, (out,in))
    lin_b:     (d_hid,)       float32   -- lin0.bias   == lin1.bias   (aliased)
    use_bf16:  run the four matmuls with bf16 MXU operands + f32 accumulation.
    """
    batch, d_hid = x.shape
    if tm is None:
        tm = _pick_tm(batch)
    assert batch % tm == 0

    wdt = jnp.bfloat16 if use_bf16 else x.dtype
    p = mm_param.astype(wdt)
    w = lin_w.astype(wdt)
    lin_b2 = lin_b.reshape(1, d_hid).astype(jnp.float32)

    grid = (batch // tm,)
    itemsize = x.dtype.itemsize
    flops = 4 * 2 * batch * d_hid * d_hid   # four (batch,d)x(d,d) matmuls
    bytes_accessed = (
        2 * batch * d_hid * itemsize             # x, y
        + 2 * d_hid * d_hid * p.dtype.itemsize   # mm_param, lin_w
        + d_hid * 4                              # bias
        + batch * d_hid * itemsize               # output
    )

    return pl.pallas_call(
        _fused_kernel,
        out_shape=jax.ShapeDtypeStruct((batch, d_hid), x.dtype),
        grid_spec=pltpu.PrefetchScalarGridSpec(
            num_scalar_prefetch=0,
            grid=grid,
            in_specs=[
                pl.BlockSpec((tm, d_hid), lambda i: (i, 0)),       # x tile
                pl.BlockSpec((tm, d_hid), lambda i: (i, 0)),       # y tile
                pl.BlockSpec((d_hid, d_hid), lambda i: (0, 0)),    # mm_param (shared / aliased)
                pl.BlockSpec((d_hid, d_hid), lambda i: (0, 0)),    # lin weight (shared / aliased)
                pl.BlockSpec((1, d_hid), lambda i: (0, 0)),        # lin bias
            ],
            out_specs=pl.BlockSpec((tm, d_hid), lambda i: (i, 0)),
        ),
        compiler_params=pltpu.CompilerParams(
            dimension_semantics=("parallel",),
        ),
        cost_estimate=pl.CostEstimate(
            flops=flops, transcendentals=0, bytes_accessed=bytes_accessed),
    )(x, y, p, w, lin_b2)


def _reference(x, y, mm_param, lin_w, lin_b, compute_dtype=None):
    """Pure-JAX reference; compute_dtype mirrors the kernel's MXU operand dtype."""
    cdt = compute_dtype if compute_dtype is not None else x.dtype
    p = mm_param.astype(cdt)
    w = lin_w.astype(cdt)
    lin_dims = (((1,), (1,)), ((), ()))
    h = lax.dot_general(x.astype(cdt), p, dimension_numbers=(((1,), (0,)), ((), ())),
                        preferred_element_type=jnp.float32)
    h = h + y
    h = lax.dot_general(h.astype(cdt), w, dimension_numbers=lin_dims,
                        preferred_element_type=jnp.float32) + lin_b
    h = jnp.maximum(h, 0.0)
    h = lax.dot_general(h.astype(cdt), p, dimension_numbers=(((1,), (0,)), ((), ())),
                        preferred_element_type=jnp.float32)
    h = lax.dot_general(h.astype(cdt), w, dimension_numbers=lin_dims,
                        preferred_element_type=jnp.float32) + lin_b
    h = jnp.maximum(h, 0.0)
    return h.astype(x.dtype)


if __name__ == "__main__":
    d_hid = 128
    batch = 256   # -> tm=128, grid=(2,): amortized pipeline overhead, 2 tiles for v7x TCs

    key = jax.random.PRNGKey(0)
    kx, ky, kp, kw, kb = jax.random.split(key, 5)

    x = jax.random.normal(kx, (batch, d_hid), dtype=jnp.float32)
    y = jax.random.normal(ky, (batch, d_hid), dtype=jnp.float32)

    # Parameters (mm_param1/lin1 alias mm_param0/lin0, so only one copy of each
    # is materialized, matching the PyTorch module).
    mm_param = jax.random.normal(kp, (d_hid, d_hid), dtype=jnp.float32)
    bound = 1.0 / (d_hid ** 0.5)
    lin_w = jax.random.uniform(kw, (d_hid, d_hid), minval=-bound, maxval=bound,
                               dtype=jnp.float32)
    lin_b = jax.random.uniform(kb, (d_hid,), minval=-bound, maxval=bound,
                               dtype=jnp.float32)

    # f32 path (exact semantics of the PyTorch module).
    out = jax.block_until_ready(model_with_param_alias(x, y, mm_param, lin_w, lin_b))
    ref = _reference(x, y, mm_param, lin_w, lin_b)
    assert out.shape == (batch, d_hid)
    assert jnp.allclose(out, ref, rtol=1e-3, atol=1e-2), "f32 mismatch vs reference"

    # bf16-operand / f32-accumulation path, checked against a reference that
    # mirrors the same casts (only accumulation order differs).
    out_bf16 = jax.block_until_ready(
        model_with_param_alias(x, y, mm_param, lin_w, lin_b, use_bf16=True))
    ref_bf16 = _reference(x, y, mm_param, lin_w, lin_b, compute_dtype=jnp.bfloat16)
    assert jnp.allclose(out_bf16, ref_bf16, rtol=2e-2, atol=0.5), "bf16 mismatch vs reference"

    print("KERNEL_OK")
</pallas_src>

<mosaic_0001>
module attributes {stable_mosaic.version = 11 : i64} {
  func.func @_fused_kernel(%arg0: i32, %arg1: memref<128x128xf32, #tpu.memory_space<vmem>>, %arg2: memref<128x128xf32, #tpu.memory_space<vmem>>, %arg3: memref<128x128xf32, #tpu.memory_space<vmem>>, %arg4: memref<128x128xf32, #tpu.memory_space<vmem>>, %arg5: memref<1x128xf32, #tpu.memory_space<vmem>>, %arg6: memref<128x128xf32, #tpu.memory_space<vmem>>) attributes {dimension_semantics = [#tpu.dimension_semantics<parallel>], iteration_bounds = array<i64: 2>, scalar_prefetch = 0 : i64, scratch_operands = 0 : i64, tpu.core_type = #tpu.core_type<tc>, window_params = [{transform_indices = @transform_0, window_bounds = array<i64: 128, 128>}, {transform_indices = @transform_1, window_bounds = array<i64: 128, 128>}, {pipeline_mode = #tpu.pipeline_mode<synchronous>, transform_indices = @transform_2, window_bounds = array<i64: 128, 128>}, {pipeline_mode = #tpu.pipeline_mode<synchronous>, transform_indices = @transform_3, window_bounds = array<i64: 128, 128>}, {pipeline_mode = #tpu.pipeline_mode<synchronous>, transform_indices = @transform_4, window_bounds = array<i64: 1, 128>}, {transform_indices = @transform_5, window_bounds = array<i64: 128, 128>}]} {
    %c0 = arith.constant 0 : index
    %c0_0 = arith.constant 0 : index
    %0 = vector.load %arg5[%c0, %c0_0] : memref<1x128xf32, #tpu.memory_space<vmem>>, vector<1x128xf32>
    %c0_1 = arith.constant 0 : index
    %c0_2 = arith.constant 0 : index
    %1 = vector.load %arg1[%c0_1, %c0_2] : memref<128x128xf32, #tpu.memory_space<vmem>>, vector<128x128xf32>
    %c0_3 = arith.constant 0 : index
    %c0_4 = arith.constant 0 : index
    %2 = vector.load %arg3[%c0_3, %c0_4] : memref<128x128xf32, #tpu.memory_space<vmem>>, vector<128x128xf32>
    %cst = arith.constant dense<0.000000e+00> : vector<128x128xf32>
    %3 = tpu.matmul %1, %2, %cst {dimension_numbers = #tpu.dot_dimension_numbers<[1], [0], [0], [1], [0, 0, 1, 1], [], []>} : vector<128x128xf32>, vector<128x128xf32>, vector<128x128xf32> -> vector<128x128xf32>
    %c0_5 = arith.constant 0 : index
    %c0_6 = arith.constant 0 : index
    %4 = vector.load %arg2[%c0_5, %c0_6] : memref<128x128xf32, #tpu.memory_space<vmem>>, vector<128x128xf32>
    %5 = arith.addf %3, %4 : vector<128x128xf32>
    %c0_7 = arith.constant 0 : index
    %c0_8 = arith.constant 0 : index
    %6 = vector.load %arg4[%c0_7, %c0_8] : memref<128x128xf32, #tpu.memory_space<vmem>>, vector<128x128xf32>
    %cst_9 = arith.constant dense<0.000000e+00> : vector<128x128xf32>
    %7 = tpu.matmul %5, %6, %cst_9 {dimension_numbers = #tpu.dot_dimension_numbers<[1], [1], [0], [0], [0, 0, 1, 0], [], []>} : vector<128x128xf32>, vector<128x128xf32>, vector<128x128xf32> -> vector<128x128xf32>
    %8 = vector.broadcast %0 : vector<1x128xf32> to vector<128x128xf32>
    %9 = arith.addf %7, %8 : vector<128x128xf32>
    %cst_10 = arith.constant 0.000000e+00 : f32
    %10 = vector.broadcast %cst_10 : f32 to vector<128x128xf32>
    %11 = arith.maximumf %9, %10 : vector<128x128xf32>
    %c0_11 = arith.constant 0 : index
    %c0_12 = arith.constant 0 : index
    %12 = vector.load %arg3[%c0_11, %c0_12] : memref<128x128xf32, #tpu.memory_space<vmem>>, vector<128x128xf32>
    %cst_13 = arith.constant dense<0.000000e+00> : vector<128x128xf32>
    %13 = tpu.matmul %11, %12, %cst_13 {dimension_numbers = #tpu.dot_dimension_numbers<[1], [0], [0], [1], [0, 0, 1, 1], [], []>} : vector<128x128xf32>, vector<128x128xf32>, vector<128x128xf32> -> vector<128x128xf32>
    %c0_14 = arith.constant 0 : index
    %c0_15 = arith.constant 0 : index
    %14 = vector.load %arg4[%c0_14, %c0_15] : memref<128x128xf32, #tpu.memory_space<vmem>>, vector<128x128xf32>
    %cst_16 = arith.constant dense<0.000000e+00> : vector<128x128xf32>
    %15 = tpu.matmul %13, %14, %cst_16 {dimension_numbers = #tpu.dot_dimension_numbers<[1], [1], [0], [0], [0, 0, 1, 0], [], []>} : vector<128x128xf32>, vector<128x128xf32>, vector<128x128xf32> -> vector<128x128xf32>
    %16 = vector.broadcast %0 : vector<1x128xf32> to vector<128x128xf32>
    %17 = arith.addf %15, %16 : vector<128x128xf32>
    %cst_17 = arith.constant 0.000000e+00 : f32
    %18 = vector.broadcast %cst_17 : f32 to vector<128x128xf32>
    %19 = arith.maximumf %17, %18 : vector<128x128xf32>
    %c0_18 = arith.constant 0 : index
    %c0_19 = arith.constant 0 : index
    %20 = vector.load %arg6[%c0_18, %c0_19] : memref<128x128xf32, #tpu.memory_space<vmem>>, vector<128x128xf32>
    tpu.vector_store %arg6[%c0_18, %c0_19], %19 {strides = array<i32>} : memref<128x128xf32, #tpu.memory_space<vmem>>, vector<128x128xf32>,
    return
  }
  func.func @transform_0(%arg0: i32) -> (i32, i32) {
    %c0_i32 = arith.constant 0 : i32
    %c0_i32_0 = arith.constant 0 : i32
    return %arg0, %c0_i32 : i32, i32
  }
  func.func @transform_1(%arg0: i32) -> (i32, i32) {
    %c0_i32 = arith.constant 0 : i32
    %c0_i32_0 = arith.constant 0 : i32
    return %arg0, %c0_i32 : i32, i32
  }
  func.func @transform_2(%arg0: i32) -> (i32, i32) {
    %c0_i32 = arith.constant 0 : i32
    %c0_i32_0 = arith.constant 0 : i32
    %c0_i32_1 = arith.constant 0 : i32
    return %c0_i32, %c0_i32_0 : i32, i32
  }
  func.func @transform_3(%arg0: i32) -> (i32, i32) {
    %c0_i32 = arith.constant 0 : i32
    %c0_i32_0 = arith.constant 0 : i32
    %c0_i32_1 = arith.constant 0 : i32
    return %c0_i32, %c0_i32_0 : i32, i32
  }
  func.func @transform_4(%arg0: i32) -> (i32, i32) {
    %c0_i32 = arith.constant 0 : i32
    %c0_i32_0 = arith.constant 0 : i32
    %c0_i32_1 = arith.constant 0 : i32
    return %c0_i32, %c0_i32_0 : i32, i32
  }
  func.func @transform_5(%arg0: i32) -> (i32, i32) {
    %c0_i32 = arith.constant 0 : i32
    %c0_i32_0 = arith.constant 0 : i32
    return %arg0, %c0_i32 : i32, i32
  }
}

</mosaic_0001>

<bundles_post_ra>
// kernel: tpu_custom_call.1
= control target key start
LH: loop header
LB: loop body
LE: loop exit
PB: predicated region body
PF: predicated region fallthrough
CT: control target
= control target key end

     0   :  { %s2263_s0 = inlined_call_operand.hbm [shape: f32[256,128], index: 0, kind: input, shape index: {}]   ;;  %s2264_s1 = inlined_call_operand.hbm [shape: f32[256,128], index: 1, kind: input, shape index: {}]   ;;  %s2265_s2 = inlined_call_operand.hbm [shape: f32[128,128], index: 2, kind: input, shape index: {}]   ;;  %s2266_s3 = inlined_call_operand.hbm [shape: f32[128,128], index: 3, kind: input, shape index: {}]   ;;  %s2267_s4 = inlined_call_operand.vmem [shape: f32[1,128], index: 4, kind: input, shape index: {}]   ;;  %s2268_s5 = inlined_call_operand.hbm [shape: f32[256,128], index: 5, kind: output, shape index: {}]  }
   0x1   :  { %2276 = sst [smem:[#allocation16_spill]] %s2263_s0 }
   0x2   :  { %2277 = sst [smem:[#allocation17_spill]] %s2265_s2 }
   0x3   :  { %10 = vsyncpa [#allocation3], 0 }
   0x4   :  { %12 = vsyncpa [#allocation3 + $0x1], 0 }
   0x5   :  { %13 = vsyncpa [#allocation6], 0 }
   0x6   :  { %15 = vsyncpa [#allocation6 + $0x1], 0 }
   0x7   :  { %16 = vsyncpa [#allocation9], 0 }
   0x8   :  { %17 = vsyncpa [#allocation4], 0 }
   0x9   :  { %19 = vsyncpa [#allocation4 + $0x1], 0  ;;  %s1822_s18 = smov 0   ;;  %s1824_s19 = smov 0  }
   0xa   :  { %s1826_s20 = smov 0   ;;  %s1828_s21 = smov 0  }
   0xb LB: > { %s1843_s22 = sadd.s32 4294967295, %s1781_s21   ;;  %s1143_s23 = sadd.s32 4294967294, %s1781_s21   ;;  %s1781_s21 = sphi %s1828_s21, %s2299_s21   ;;  %s1777_s20 = sphi %s1826_s20, %s2298_s20   ;;  %s1773_s19 = sphi %s1824_s19, %s2297_s19   ;;  %s1769_s18 = sphi %s1822_s18, %s2296_s18  }
   0xc   : > { %p45_p0 = scmp.ne.s32.totalorder %s1773_s19, %s1769_s18  ;;  %p2273_p1 = scmp.eq.s32.totalorder %s1843_s22, 0 }
   0xd   : > { %p158_p2 = scmp.eq.s32.totalorder %s1843_s22, 1  ;;  %p164_p3 = scmp.eq.s32.totalorder %s1143_s23, 1 }
   0xe   : > { %p1852_p4 = por %p2273_p1, %p45_p0  ;;  %p1144_p5 = scmp.ge.s32.totalorder %s1781_s21, 1 }
   0xf   : > { %p1857_p6 = por %p164_p3, %p45_p0  ;;  %p171_p7 = scmp.lt.s32.totalorder %s1781_s21, 3 }
  0x10   : > { %s2278_s24 = scalar_select %p1852_p4, 1, 0 }
  0x11   : > { %s2279_s25 = scalar_select %p1857_p6, 1, 0 }
  0x12   : > { %p1862_p8 = pnand %p1144_p5, %p171_p7  ;;  %s1783_s27 = smov [#allocation7]  }
  0x13   : > { %s183_s28 = sshll.u32 %s1783_s27, 4  ;;  %s1784_s30 = smov [#allocation8]   ;;  %s184_s28 = int_to_ptr.vmem [resolvable:$true] %s183_s28 }
  0x14   : > { %p1535_p9 = pneg %p1862_p8  ;;  %s196_s6 = sshll.u32 %s1784_s30, 4  ;;  %s197_s6 = int_to_ptr.vmem [resolvable:$true] %s196_s6 }
  0x15   : > { %s1608_s7 = scalar_lea.vmem %s184_s28, 2048  ;;  %p1616_p5 = scmp.lt.s32.totalorder %s184_s28, %s184_s28 }
  0x16   : > { %p1871_p11 = pnand %p1535_p9, %p2273_p1  ;;  %p1609_p13 = scmp.ne.s32.totalorder %s184_s28, %s1608_s7 }
  0x17   : > { %p1617_p7 = scmp.lt.s32.totalorder %s1608_s7, %s1608_s7 }
  0x18   : > { %p1599_p12 = pneg %p1871_p11 }
  0x19   : > { %p1618_p10 = por %p1617_p7, %p1616_p5 }
  0x1a   : > { %p1611_p0 = pnand %p1609_p13, %p1599_p12 }
  0x1c   : > { %p1612_p3 = pneg %p1611_p0 }
  0x1e   : > { %p1619_p9 = pnand %p1618_p10, %p1612_p3 }
  0x20   : > { %1622 = shalt.err (!%p1619_p9)
}
  0x21   : > { %s2269_s8 = smov 128   ;;  %s2271_s9 = smov 8  }
  0x22   : > { %s2282_s2 = sld [smem:[#allocation17_spill]]  ;;  %s1634_s12 = scalar_lea.vmem %s197_s6, 2048 }
  0x23   : > { %p1635_p13 = scmp.ne.s32.totalorder %s197_s6, %s1634_s12  ;;  %p1642_p10 = scmp.lt.s32.totalorder %s197_s6, %s197_s6 }
  0x24   : > { %p1643_p3 = scmp.lt.s32.totalorder %s1634_s12, %s1634_s12 }
  0x25   : > { %p1637_p0 = pnand %p1635_p13, %p1599_p12 }
  0x26   : > { %p1644_p7 = por %p1643_p3, %p1642_p10 }
  0x27   : > { %p1638_p5 = pneg %p1637_p0 }
  0x28   : > { %1538 = dma.hbm_to_vmem [thread:$0]  (!%p1871_p11), %s2282_s2, 2048, %s184_s28, [#allocation6], %s2269_s8, %s2269_s8, %s2271_s9  }
  0x29   : > { %p1645_p9 = pnand %p1644_p7, %p1638_p5 }
  0x2b   : > { %1648 = shalt.err (!%p1645_p9)
}
  0x2c   : > { %1541 = dma.hbm_to_vmem [thread:$0]  (!%p1871_p11), %s2266_s3, 2048, %s197_s6, [#allocation9], %s2269_s8, %s2269_s8, %s2271_s9  }
  0x2d   : > { %s1900_s15 = sadd.s32 1, %s1781_s21   ;;  %s32_s16 = sadd.s32 1, %s1777_s20 }
  0x2e   : > { %s29_s17 = ssub.s32 %s1781_s21, %s1900_s15  ;;  %p39_p12 = scmp.ne.s32.totalorder %s1777_s20, %s1773_s19 }
  0x2f   : > { %p30_p13 = scmp.eq.s32.totalorder %s29_s17, 0  ;;  %p40_p0 = scmp.eq.s32.totalorder %s1781_s21, 0 }
  0x30   : > { %p1910_p5 = por %p158_p2, %p39_p12  ;;  %p1555_p10 = scmp.lt.s32.totalorder %s1781_s21, 2 }
  0x31   : > { %s1916_s27 = scalar_select %p30_p13, %s1777_s20, %s32_s16  }
  0x32   : > { %s2283_s23 = scalar_select %p1910_p5, 1, 0 }
  0x33   : > { %p41_p3 = por %p40_p0, %p39_p12  ;;  %s213_s28 = sand.u32 1, %s1777_s20  }
  0x34   : > { %s1148_s29 = sshll.u32 %s213_s28, 7  ;;  %s1166_s30 = sshll.u32 %s1781_s21, 11 }
  0x35   : > { %s2284_s0 = sld [smem:[#allocation16_spill]]  ;;  %s217_s11 = scalar_lea.vmem [#allocation2], %s1148_s29 }
  0x36   : > { %s224_s12 = sshll.u32 %s217_s11, 4  ;;  %p1927_p2 = pnand %p1555_p10, %p41_p3  ;;  %s1925_s12 = int_to_ptr.vmem [resolvable:$true] %s224_s12 }
  0x37   : > { %s1934_s17 = scalar_lea.hbm %s2264_s1, %s1166_s30  ;;  %s238_s6 = scalar_lea.vmem [#allocation5], %s1148_s29 }
  0x38   : > { %s1936_s7 = sshll.u32 %s238_s6, 4  ;;  %s1938_s8 = scalar_lea.sflag [#allocation3], %s213_s28  ;;  %s1969_s7 = int_to_ptr.vmem [resolvable:$true] %s1936_s7 }
  0x39   : > { %p1651_p7 = pneg %p1927_p2 }
  0x3b   : > { %s1923_s10 = scalar_lea.hbm %s2284_s0, %s1166_s30  ;;  %s1654_s14 = scalar_lea.hbm %s2284_s0, 4096 }
  0x3c   : > { %s1649_s9 = scalar_lea.hbm %s1923_s10, 2048  ;;  %p1655_p13 = scmp.lt.s32.totalorder %s1923_s10, %s2284_s0 }
  0x3d   : > { %p1650_p11 = scmp.ne.s32.totalorder %s1923_s10, %s1649_s9  ;;  %p1656_p0 = scmp.lt.s32.totalorder %s1654_s14, %s1649_s9 }
  0x3f   : > { %p1652_p9 = pnand %p1651_p7, %p1650_p11  ;;  %p1657_p10 = por %p1656_p0, %p1655_p13 }
  0x41   : > { %p1653_p12 = pneg %p1652_p9 }
  0x43   : > { %p1658_p3 = pnand %p1657_p10, %p1653_p12 }
  0x45   : > { %1661 = shalt.err (!%p1658_p3)
}
  0x46   : > { %s1662_s28 = scalar_lea.vmem %s1925_s12, 2048  ;;  %s1787_s2 = smov [#allocation2]  }
  0x47   : > { %p1663_p1 = scmp.ne.s32.totalorder %s1925_s12, %s1662_s28  ;;  %s1667_s29 = sshll.u32 %s1787_s2, 4  ;;  %s1668_s29 = int_to_ptr.vmem [resolvable:$false] %s1667_s29 }
  0x48   : > { %s1669_s6 = scalar_lea.vmem %s1668_s29, 4096  ;;  %p1670_p6 = scmp.lt.s32.totalorder %s1925_s12, %s1668_s29 }
  0x49   : > { %p1665_p11 = pnand %p1663_p1, %p1651_p7  ;;  %p1671_p5 = scmp.lt.s32.totalorder %s1669_s6, %s1662_s28 }
  0x4b   : > { %p1666_p9 = pneg %p1665_p11  ;;  %p1672_p4 = por %p1671_p5, %p1670_p6 }
  0x4d   : > { %p1673_p13 = pnand %p1672_p4, %p1666_p9 }
  0x4f   : > { %1676 = shalt.err (!%p1673_p13)
}
  0x50   : > { %s2286_s9 = smov 8   ;;  %s2287_s11 = smov 128  }
  0x51   : > { %1545 = dma.hbm_to_vmem [thread:$0]  (!%p1927_p2), %s1923_s10, 2048, %s1925_s12, %s1938_s8, %s2287_s11, %s2287_s11, %s2286_s9  }
  0x52   : > { %s234_s14 = sand.u32 1, %s1781_s21   ;;  %s1677_s30 = scalar_lea.hbm %s1934_s17, 2048 }
  0x53   : > { %s235_s16 = scalar_lea.sflag [#allocation6], %s234_s14  ;;  %p1678_p1 = scmp.ne.s32.totalorder %s1934_s17, %s1677_s30 }
  0x54   : > { %s1682_s29 = scalar_lea.hbm %s2264_s1, 4096  ;;  %p1683_p5 = scmp.lt.s32.totalorder %s1934_s17, %s2264_s1 }
  0x55   : > { %p1680_p4 = pnand %p1678_p1, %p1651_p7  ;;  %p1684_p12 = scmp.lt.s32.totalorder %s1682_s29, %s1677_s30 }
  0x57   : > { %p1681_p6 = pneg %p1680_p4  ;;  %p1685_p0 = por %p1684_p12, %p1683_p5 }
  0x59   : > { %p1686_p10 = pnand %p1685_p0, %p1681_p6 }
  0x5b   : > { %1689 = shalt.err (!%p1686_p10)
}
  0x5c   : > { %s1690_s8 = scalar_lea.vmem %s1969_s7, 2048  ;;  %s1788_s10 = smov [#allocation5]  }
  0x5d   : > { %p1691_p3 = scmp.ne.s32.totalorder %s1969_s7, %s1690_s8  ;;  %s1695_s12 = sshll.u32 %s1788_s10, 4  ;;  %s1696_s12 = int_to_ptr.vmem [resolvable:$false] %s1695_s12 }
  0x5e   : > { %s1697_s14 = scalar_lea.vmem %s1696_s12, 4096  ;;  %p1698_p13 = scmp.lt.s32.totalorder %s1969_s7, %s1696_s12 }
  0x5f   : > { %p1693_p11 = pnand %p1691_p3, %p1651_p7  ;;  %p1699_p1 = scmp.lt.s32.totalorder %s1697_s14, %s1690_s8 }
  0x61   : > { %p1694_p9 = pneg %p1693_p11  ;;  %p1700_p4 = por %p1699_p1, %p1698_p13 }
  0x63   : > { %p1701_p5 = pnand %p1700_p4, %p1694_p9 }
  0x65   : > { %1704 = shalt.err (!%p1701_p5)
}
  0x66   : > { %1548 = dma.hbm_to_vmem [thread:$0]  (!%p1927_p2), %s1934_s17, 2048, %s1969_s7, %s235_s16, %s2287_s11, %s2287_s11, %s2286_s9  }
  0x67   : > { %257 = sbr.rel (%p1862_p8) target bundleno = 987 (0x3db), region = 40  ;;  %s2000_s0 = sand.u32 (!%p1862_p8), 1, %s1773_s19  }
  0x68   : > { %s2003_s30 = sshll.u32 (!%p1862_p8), %s2000_s0, 7  ;;  %s260_s28 = scalar_lea.sflag (!%p1862_p8), [#allocation3], %s2000_s0 }
  0x69   : > { %s2007_s13 = scalar_lea.vmem (!%p1862_p8), [#allocation2], %s2003_s30  ;;  %p2288_p7 = scmp.ne.s32.totalorder (!%p1862_p8), %s2278_s24, 0 }
  0x6c   : > { %1748 = dma.done.wait (%p2288_p7), %s260_s28, 2048  }
  0x6d   : > { %1750 = vsyncadd (%p2288_p7), %s260_s28, 4294965248  ;;  %s268_s26 = sand.u32 1, %s1843_s22   ;;  %s2015_s7 = scalar_lea.vmem [#allocation5], %s2003_s30 }
  0x6e   : > { %s269_s17 = scalar_lea.sflag [#allocation6], %s268_s26 }
  0x6f   : > { %1752 = dma.done.wait (%p2288_p7), %s269_s17, 2048  }
  0x70   : > { %1754 = vsyncadd (%p2288_p7), %s269_s17, 4294965248  ;;  %p2289_p8 = scmp.eq.s32.totalorder %s1843_s22, 0 }
  0x72   : > { %1756 = dma.done.wait (%p2289_p8), [#allocation6], 2048   ;;  %p2290_p2 = pmov %p2289_p8 }
  0x74   : > { %1758 = vsyncadd (%p2290_p2), [#allocation6], 4294965248  ;;  %p2291_p6 = pmov %p2290_p2 }
  0x75   : > { %p2292_p12 = pmov %p2290_p2 }
  0x76   : > { %1760 = dma.done.wait (%p2291_p6), [#allocation9], 2048  }
  0x77   : > { %1762 = vsyncadd (%p2292_p12), [#allocation9], 4294965248  ;;  %v347_v0 = vld [vmem:[#allocation7 + $0x78] sm:$0xff]  ;;  %v346_v1 = vld [vmem:[#allocation7 + $0x70] sm:$0xff]  ;;  %s2181_s11 = scalar_lea.vmem [#allocation10], %s2003_s30  ;;  %s1168_s16 = sshll.u32 %s1843_s22, 11 }
  0x78   : > { %1297 = vmatprep.subr.mxu1 %v347_v0  ;;  %1409 = vmatprep.subr.mxu0 %v347_v0  ;;  %v345_v2 = vld [vmem:[#allocation7 + $0x68] sm:$0xff]  ;;  %v344_v3 = vld [vmem:[#allocation7 + $0x60] sm:$0xff]  ;;  %v343_v5 = vld [vmem:[#allocation7 + $0x58] sm:$0xff]  ;;  %s1028_s2 = sshll.u32 %s2181_s11, 4  ;;  %s2216_s8 = scalar_lea.hbm %s2268_s5, %s1168_s16  ;;  %s2218_s2 = int_to_ptr.vmem [resolvable:$true] %s1028_s2 }
  0x79   : > { %1298 = vmatpush3.msra.mxu1 %v347_v0  ;;  %1410 = vmatpush3.msra.mxu0 %v347_v0  ;;  %v316_v4 = vld [vmem:[%s2007_s13] sm:$0xff]  ;;  %v342_v6 = vld [vmem:[#allocation7 + $0x50] sm:$0xff]  ;;  %v341_v7 = vld [vmem:[#allocation7 + $0x48] sm:$0xff]  ;;  %s1015_s22 = scalar_lea.sflag [#allocation4], %s2000_s0  ;;  %s1705_s10 = scalar_lea.vmem %s2218_s2, 2048 }
  0x7a   : > { %1299 = vmatprep.subr.mxu1 %v346_v1  ;;  %1411 = vmatprep.subr.mxu0 %v346_v1  ;;  %v340_v8 = vld [vmem:[#allocation7 + $0x40] sm:$0xff]  ;;  %v339_v9 = vld [vmem:[#allocation7 + $0x38] sm:$0xff]  ;;  %v338_v10 = vld [vmem:[#allocation7 + $0x30] sm:$0xff]  ;;  %p1706_p0 = scmp.ne.s32.totalorder %s2218_s2, %s1705_s10  ;;  %p2293_p10 = scmp.ne.s32.totalorder %s2283_s23, 0 }
  0x7b   : > { %1300 = vmatpush3.msra.mxu1 %v346_v1  ;;  %1412 = vmatpush3.msra.mxu0 %v346_v1  ;;  %v337_v11 = vld [vmem:[#allocation7 + $0x28] sm:$0xff]  ;;  %v336_v12 = vld [vmem:[#allocation7 + $0x20] sm:$0xff]  ;;  %v335_v13 = vld [vmem:[#allocation7 + $0x18] sm:$0xff]  ;;  %s1789_s12 = smov [#allocation10]  }
  0x7c   : > { %1301 = vmatprep.subr.mxu1 %v345_v2  ;;  %1413 = vmatprep.subr.mxu0 %v345_v2  ;;  %v334_v14 = vld [vmem:[#allocation7 + $0x10] sm:$0xff]  ;;  %v333_v15 = vld [vmem:[#allocation7 + $0x8] sm:$0xff]  ;;  %v332_v16 = vld [vmem:[#allocation7] sm:$0xff]  ;;  %p1707_p3 = pnand %p1706_p0, %p2293_p10  ;;  %s1709_s14 = sshll.u32 %s1789_s12, 4  ;;  %s1710_s14 = int_to_ptr.vmem [resolvable:$false] %s1709_s14 }
  0x7d   : > { %1302 = vmatpush3.msra.mxu1 %v345_v2  ;;  %1329 = vmatprep.mubr.f32.mxu1 %v316_v4  ;;  %v317_v17 = vld [vmem:[%s2007_s13 + $0x8] sm:$0xff]  ;;  %v2031_v18 = vld [vmem:[#allocation8 + $0x78] sm:$0xff]  ;;  %v318_v19 = vld [vmem:[%s2007_s13 + $0x10] sm:$0xff]  ;;  %s1711_s30 = scalar_lea.vmem %s1710_s14, 4096  ;;  %p1712_p9 = scmp.lt.s32.totalorder %s2218_s2, %s1710_s14 }
  0x7e   : > { %1303 = vmatprep.subr.mxu1 %v344_v3  ;;  %1414 = vmatpush3.msra.mxu0 %v345_v2  ;;  %v2034_v20 = vld [vmem:[#allocation8 + $0x70] sm:$0xff]  ;;  %v319_v21 = vld [vmem:[%s2007_s13 + $0x18] sm:$0xff]  ;;  %v320_v22 = vld [vmem:[%s2007_s13 + $0x20] sm:$0xff]  ;;  %p1708_p11 = pneg %p1707_p3  ;;  %p1713_p13 = scmp.lt.s32.totalorder %s1711_s30, %s1705_s10 }
  0x7f   : > { %1304 = vmatpush3.msra.mxu1 %v344_v3  ;;  %1415 = vmatprep.subr.mxu0 %v344_v3  ;;  %v2041_v23 = vld [vmem:[#allocation8 + $0x68] sm:$0xff]  ;;  %v322_v25 = vld [vmem:[%s2007_s13 + $0x30] sm:$0xff]  ;;  %v2048_v26 = vld [vmem:[#allocation8 + $0x60] sm:$0xff] }
  0x80   : > { %1305 = vmatprep.subr.mxu1 %v343_v5  ;;  %1416 = vmatpush3.msra.mxu0 %v344_v3  ;;  %v321_v24 = vld [vmem:[%s2007_s13 + $0x28] sm:$0xff]  ;;  %v323_v27 = vld [vmem:[%s2007_s13 + $0x38] sm:$0xff]  ;;  %v324_v28 = vld [vmem:[%s2007_s13 + $0x40] sm:$0xff]  ;;  %p1714_p1 = por %p1713_p13, %p1712_p9 }
  0x81   : > { %1306 = vmatpush3.msra.mxu1 %v343_v5  ;;  %1417 = vmatprep.subr.mxu0 %v343_v5  ;;  %v2054_v29 = vld [vmem:[#allocation8 + $0x58] sm:$0xff]  ;;  %v325_v30 = vld [vmem:[%s2007_s13 + $0x48] sm:$0xff]  ;;  %v326_v31 = vld [vmem:[%s2007_s13 + $0x50] sm:$0xff] }
  0x82   : > { %1307 = vmatprep.subr.mxu1 %v342_v6  ;;  %1418 = vmatpush3.msra.mxu0 %v343_v5  ;;  %v2060_v32 = vld [vmem:[#allocation8 + $0x50] sm:$0xff]  ;;  %v327_v33 = vld [vmem:[%s2007_s13 + $0x58] sm:$0xff]  ;;  %v328_v34 = vld [vmem:[%s2007_s13 + $0x60] sm:$0xff]  ;;  %p1715_p4 = pnand %p1714_p1, %p1708_p11 }
  0x83   : > { %1308 = vmatpush3.msra.mxu1 %v342_v6  ;;  %1419 = vmatprep.subr.mxu0 %v342_v6  ;;  %v2066_v35 = vld [vmem:[#allocation8 + $0x48] sm:$0xff]  ;;  %v330_v37 = vld [vmem:[%s2007_s13 + $0x70] sm:$0xff]  ;;  %v2072_v38 = vld [vmem:[#allocation8 + $0x40] sm:$0xff] }
  0x84   : > { %1309 = vmatprep.subr.mxu1 %v341_v7  ;;  %1420 = vmatpush3.msra.mxu0 %v342_v6  ;;  %v329_v36 = vld [vmem:[%s2007_s13 + $0x68] sm:$0xff]  ;;  %v331_v39 = vld [vmem:[%s2007_s13 + $0x78] sm:$0xff]  ;;  %v2081_v41 = vld [vmem:[#allocation8 + $0x30] sm:$0xff] }
  0x85   : > { %1310 = vmatpush3.msra.mxu1 %v341_v7  ;;  %1421 = vmatprep.subr.mxu0 %v341_v7  ;;  %v2077_v40 = vld [vmem:[#allocation8 + $0x38] sm:$0xff]  ;;  %v2085_v42 = vld [vmem:[#allocation8 + $0x28] sm:$0xff]  ;;  %v2089_v43 = vld [vmem:[#allocation8 + $0x20] sm:$0xff] }
  0x86   : > { %1311 = vmatprep.subr.mxu1 %v340_v8  ;;  %1422 = vmatpush3.msra.mxu0 %v341_v7  ;;  %v2093_v44 = vld [vmem:[#allocation8 + $0x18] sm:$0xff]  ;;  %v2097_v45 = vld [vmem:[#allocation8 + $0x10] sm:$0xff]  ;;  %v2101_v46 = vld [vmem:[#allocation8 + $0x8] sm:$0xff] }
  0x87   : > { %1312 = vmatpush3.msra.mxu1 %v340_v8  ;;  %1423 = vmatprep.subr.mxu0 %v340_v8  ;;  %v2106_v47 = vld [vmem:[#allocation8] sm:$0xff]  ;;  %v349_v50 = vld [vmem:[%s2015_s7 + $0x8] sm:$0xff]  ;;  %v350_v55 = vld [vmem:[%s2015_s7 + $0x10] sm:$0xff] }
  0x88   : > { %1313 = vmatprep.subr.mxu1 %v339_v9  ;;  %1424 = vmatpush3.msra.mxu0 %v340_v8  ;;  %v348_v49 = vld [vmem:[%s2015_s7] sm:$0xff]  ;;  %v351_v56 = vld [vmem:[%s2015_s7 + $0x18] sm:$0xff]  ;;  %v353_v62 = vld [vmem:[%s2015_s7 + $0x28] sm:$0xff] }
  0x89   : > { %1314 = vmatpush3.msra.mxu1 %v339_v9  ;;  %1425 = vmatprep.subr.mxu0 %v339_v9  ;;  %v352_v61 = vld [vmem:[%s2015_s7 + $0x20] sm:$0xff]  ;;  %v354_v3 = vld [vmem:[%s2015_s7 + $0x30] sm:$0xff]  ;;  %v355_v4 = vld [vmem:[%s2015_s7 + $0x38] sm:$0xff] }
  0x8a   : > { %1315 = vmatprep.subr.mxu1 %v338_v10  ;;  %1426 = vmatpush3.msra.mxu0 %v339_v9  ;;  %v356_v9 = vld [vmem:[%s2015_s7 + $0x40] sm:$0xff] }
  0x8b   : > { %1316 = vmatpush3.msra.mxu1 %v338_v10  ;;  %1427 = vmatprep.subr.mxu0 %v338_v10 }
  0x8c   : > { %1317 = vmatprep.subr.mxu1 %v337_v11  ;;  %1428 = vmatpush3.msra.mxu0 %v338_v10  ;;  %v357_v10 = vld [vmem:[%s2015_s7 + $0x48] sm:$0xff] }
  0x8d   : > { %1318 = vmatpush3.msra.mxu1 %v337_v11  ;;  %1429 = vmatprep.subr.mxu0 %v337_v11 }
  0x8e   : > { %1319 = vmatprep.subr.mxu1 %v336_v12  ;;  %1430 = vmatpush3.msra.mxu0 %v337_v11 }
  0x8f   : > { %1320 = vmatpush3.msra.mxu1 %v336_v12  ;;  %1431 = vmatprep.subr.mxu0 %v336_v12 }
  0x90   : > { %1321 = vmatprep.subr.mxu1 %v335_v13  ;;  %1432 = vmatpush3.msra.mxu0 %v336_v12 }
  0x91   : > { %1322 = vmatpush3.msra.mxu1 %v335_v13  ;;  %1433 = vmatprep.subr.mxu0 %v335_v13 }
  0x92   : > { %1323 = vmatprep.subr.mxu1 %v334_v14  ;;  %1434 = vmatpush3.msra.mxu0 %v335_v13 }
  0x93   : > { %1324 = vmatpush3.msra.mxu1 %v334_v14  ;;  %1435 = vmatprep.subr.mxu0 %v334_v14 }
  0x94   : > { %1325 = vmatprep.subr.mxu1 %v333_v15  ;;  %1436 = vmatpush3.msra.mxu0 %v334_v14 }
  0x95   : > { %1326 = vmatpush3.msra.mxu1 %v333_v15  ;;  %1437 = vmatprep.subr.mxu0 %v333_v15 }
  0x96   : > { %1327 = vmatprep.subr.mxu1 %v332_v16  ;;  %1438 = vmatpush3.msra.mxu0 %v333_v15  ;;  %v358_v15 = vld [vmem:[%s2015_s7 + $0x50] sm:$0xff] }
  0x97   : > { %1328 = vmatpush3.msra.mxu1 %v332_v16  ;;  %1439 = vmatprep.subr.mxu0 %v332_v16 }
  0x98   : > { %1330 = vmatmul.mubr.f32.vlgmr.msra.gmra.mxu1 %v317_v17  ;;  %1353 = vmatprep.subr.mxu1 %v2031_v18 }
  0x99   : > { %1332 = vmatprep.mubr.f32.mxu1 %v318_v19  ;;  %1354 = vmatpush3.xpose.msra.mxu1 %v2031_v18 }
  0x9a   : > { %1355 = vmatprep.subr.mxu1 %v2034_v20  ;;  %1440 = vmatpush3.msra.mxu0 %v332_v16  ;;  %v359_v16 = vld [vmem:[%s2015_s7 + $0x58] sm:$0xff] }
  0x9b   : > { %1465 = vmatprep.subr.mxu0 %v2031_v18 }
  0x9c   : > { %1333 = vmatmul.mubr.f32.gmra.mxu1 %v319_v21 }
  0x9d   : > { %1335 = vmatprep.mubr.f32.mxu1 %v320_v22  ;;  %1356 = vmatpush3.xpose.msra.mxu1 %v2034_v20 }
  0x9e   : > { %1357 = vmatprep.subr.mxu1 %v2041_v23 }
  0xa0   : > { %1336 = vmatmul.mubr.f32.gmra.mxu1 %v321_v24  ;;  %v360_v24 = vld [vmem:[%s2015_s7 + $0x60] sm:$0xff] }
  0xa1   : > { %1338 = vmatprep.mubr.f32.mxu1 %v322_v25  ;;  %1358 = vmatpush3.xpose.msra.mxu1 %v2041_v23  ;;  %v361_v25 = vld [vmem:[%s2015_s7 + $0x68] sm:$0xff] }
  0xa2   : > { %1359 = vmatprep.subr.mxu1 %v2048_v26 }
  0xa4   : > { %1339 = vmatmul.mubr.f32.gmra.mxu1 %v323_v27 }
  0xa5   : > { %1341 = vmatprep.mubr.f32.mxu1 %v324_v28  ;;  %1360 = vmatpush3.xpose.msra.mxu1 %v2048_v26 }
  0xa6   : > { %1361 = vmatprep.subr.mxu1 %v2054_v29 }
  0xa8   : > { %1342 = vmatmul.mubr.f32.gmra.mxu1 %v325_v30 }
  0xa9   : > { %1344 = vmatprep.mubr.f32.mxu1 %v326_v31  ;;  %1362 = vmatpush3.xpose.msra.mxu1 %v2054_v29 }
  0xaa   : > { %1363 = vmatprep.subr.mxu1 %v2060_v32 }
  0xac   : > { %1345 = vmatmul.mubr.f32.gmra.mxu1 %v327_v33  ;;  %v362_v33 = vld [vmem:[%s2015_s7 + $0x70] sm:$0xff] }
  0xad   : > { %1347 = vmatprep.mubr.f32.mxu1 %v328_v34  ;;  %1364 = vmatpush3.xpose.msra.mxu1 %v2060_v32  ;;  %v363_v34 = vld [vmem:[%s2015_s7 + $0x78] sm:$0xff] }
  0xae   : > { %1365 = vmatprep.subr.mxu1 %v2066_v35 }
  0xb0   : > { %1348 = vmatmul.mubr.f32.gmra.mxu1 %v329_v36 }
  0xb1   : > { %1350 = vmatprep.mubr.f32.mxu1 %v330_v37  ;;  %1366 = vmatpush3.xpose.msra.mxu1 %v2066_v35 }
  0xb2   : > { %1367 = vmatprep.subr.mxu1 %v2072_v38 }
  0xb4   : > { %1351 = vmatmul.mubr.f32.gmra.mxu1 %v331_v39 }
  0xb5   : > { %1368 = vmatpush3.xpose.msra.mxu1 %v2072_v38 }
  0xb6   : > { %1369 = vmatprep.subr.mxu1 %v2077_v40 }
  0xb9   : > { %1370 = vmatpush3.xpose.msra.mxu1 %v2077_v40 }
  0xba   : > { %1371 = vmatprep.subr.mxu1 %v2081_v41 }
  0xbd   : > { %1372 = vmatpush3.xpose.msra.mxu1 %v2081_v41 }
  0xbe   : > { %1373 = vmatprep.subr.mxu1 %v2085_v42 }
  0xc1   : > { %1374 = vmatpush3.xpose.msra.mxu1 %v2085_v42 }
  0xc2   : > { %1375 = vmatprep.subr.mxu1 %v2089_v43 }
  0xc5   : > { %1376 = vmatpush3.xpose.msra.mxu1 %v2089_v43 }
  0xc6   : > { %1377 = vmatprep.subr.mxu1 %v2093_v44 }
  0xc9   : > { %1378 = vmatpush3.xpose.msra.mxu1 %v2093_v44 }
  0xca   : > { %1379 = vmatprep.subr.mxu1 %v2097_v45 }
  0xcd   : > { %1380 = vmatpush3.xpose.msra.mxu1 %v2097_v45 }
  0xce   : > { %1381 = vmatprep.subr.mxu1 %v2101_v46 }
  0xd1   : > { %1382 = vmatpush3.xpose.msra.mxu1 %v2101_v46 }
  0xd2   : > { %1383 = vmatprep.subr.mxu1 %v2106_v47 }
  0xd5   : > { %1384 = vmatpush3.xpose.msra.mxu1 %v2106_v47 }
 0x158   : > { %v1331_v48 = vpop.f32.mrf.mxu1 }
 0x159   : > { %v436_v53 = vadd.f32 %v1331_v48, %v349_v50  ;;  %v2129_v48 = vld [vmem:[%s2267_s4] ss:$0 sm:$0xff] }
 0x15a   : > { %v430_v51 = vpop.f32.mrf.mxu1 }
 0x15b   : > { %v431_v52 = vadd.f32 %v430_v51, %v348_v49 }
 0x15c   : > { %v1334_v54 = vpop.f32.mrf.mxu1 }
 0x15d   : > { %1385 = vmatprep.mubr.f32.mxu1 %v431_v52  ;;  %v446_v59 = vadd.f32 %v1334_v54, %v351_v56 }
 0x15e   : > { %v440_v57 = vpop.f32.mrf.mxu1  ;;  %1386 = vmatmul.mubr.f32.vlgmr.msra.gmra.mxu1 %v436_v53 }
 0x15f   : > { %v441_v58 = vadd.f32 %v440_v57, %v350_v55 }
 0x160   : > { %v1337_v60 = vpop.f32.mrf.mxu1 }
 0x161   : > { %1388 = vmatprep.mubr.f32.mxu1 %v441_v58  ;;  %v456_v1 = vadd.f32 %v1337_v60, %v353_v62 }
 0x162   : > { %v450_v63 = vpop.f32.mrf.mxu1  ;;  %1389 = vmatmul.mubr.f32.gmra.mxu1 %v446_v59 }
 0x163   : > { %v451_v0 = vadd.f32 %v450_v63, %v352_v61 }
 0x164   : > { %v1340_v2 = vpop.f32.mrf.mxu1 }
 0x165   : > { %1391 = vmatprep.mubr.f32.mxu1 %v451_v0  ;;  %v466_v7 = vadd.f32 %v1340_v2, %v355_v4 }
 0x166   : > { %v460_v5 = vpop.f32.mrf.mxu1  ;;  %1392 = vmatmul.mubr.f32.gmra.mxu1 %v456_v1 }
 0x167   : > { %v461_v6 = vadd.f32 %v460_v5, %v354_v3 }
 0x168   : > { %v1343_v8 = vpop.f32.mrf.mxu1 }
 0x169   : > { %1394 = vmatprep.mubr.f32.mxu1 %v461_v6  ;;  %v476_v13 = vadd.f32 %v1343_v8, %v357_v10 }
 0x16a   : > { %v470_v11 = vpop.f32.mrf.mxu1  ;;  %1395 = vmatmul.mubr.f32.gmra.mxu1 %v466_v7 }
 0x16b   : > { %v471_v12 = vadd.f32 %v470_v11, %v356_v9 }
 0x16c   : > { %v1346_v14 = vpop.f32.mrf.mxu1 }
 0x16d   : > { %1397 = vmatprep.mubr.f32.mxu1 %v471_v12  ;;  %v486_v21 = vadd.f32 %v1346_v14, %v359_v16 }
 0x16e   : > { %v480_v17 = vpop.f32.mrf.mxu1  ;;  %1398 = vmatmul.mubr.f32.gmra.mxu1 %v476_v13 }
 0x16f   : > { %v481_v19 = vadd.f32 %v480_v17, %v358_v15 }
 0x170   : > { %v1349_v22 = vpop.f32.mrf.mxu1 }
 0x171   : > { %1400 = vmatprep.mubr.f32.mxu1 %v481_v19  ;;  %v496_v30 = vadd.f32 %v1349_v22, %v361_v25 }
 0x172   : > { %v490_v27 = vpop.f32.mrf.mxu1  ;;  %1401 = vmatmul.mubr.f32.gmra.mxu1 %v486_v21 }
 0x173   : > { %v491_v28 = vadd.f32 %v490_v27, %v360_v24 }
 0x174   : > { %v1352_v31 = vpop.f32.mrf.mxu1 }
 0x175   : > { %1403 = vmatprep.mubr.f32.mxu1 %v491_v28  ;;  %v506_v39 = vadd.f32 %v1352_v31, %v363_v34 }
 0x176   : > { %v500_v36 = vpop.f32.mrf.mxu1  ;;  %1404 = vmatmul.mubr.f32.gmra.mxu1 %v496_v30 }
 0x177   : > { %v501_v37 = vadd.f32 %v500_v36, %v362_v33 }
 0x179   : > { %1406 = vmatprep.mubr.f32.mxu1 %v501_v37 }
 0x17a   : > { %1407 = vmatmul.mubr.f32.gmra.mxu1 %v506_v39 }
 0x21e   : > { %v1387_v49 = vpop.f32.mrf.mxu1 }
 0x21f   : > { %v603_v50 = vadd.f32 %v1387_v49, %v2129_v48 }
 0x220   : > { %v597_v51 = vpop.f32.mrf.mxu1 }
 0x221   : > { %v598_v52 = vadd.f32 %v2129_v48, %v597_v51  ;;  %v677_v55 = vmax.f32 %v603_v50, 0.0 }
 0x222   : > { %v1390_v53 = vpop.f32.mrf.mxu1 }
 0x223   : > { %v676_v54 = vmax.f32 %v598_v52, 0.0  ;;  %v613_v56 = vadd.f32 %v1390_v53, %v2129_v48 }
 0x224   : > { %v607_v57 = vpop.f32.mrf.mxu1 }
 0x225   : > { %v608_v58 = vadd.f32 %v2129_v48, %v607_v57  ;;  %1441 = vmatprep.mubr.f32.mxu0 %v676_v54  ;;  %v679_v61 = vmax.f32 %v613_v56, 0.0 }
 0x226   : > { %v1393_v59 = vpop.f32.mrf.mxu1  ;;  %1442 = vmatmul.mubr.f32.vlgmr.msra.gmra.mxu0 %v677_v55 }
 0x227   : > { %v678_v60 = vmax.f32 %v608_v58, 0.0  ;;  %1466 = vmatpush3.xpose.msra.mxu0 %v2031_v18  ;;  %v623_v62 = vadd.f32 %v1393_v59, %v2129_v48 }
 0x228   : > { %v617_v63 = vpop.f32.mrf.mxu1  ;;  %1467 = vmatprep.subr.mxu0 %v2034_v20 }
 0x229   : > { %v618_v0 = vadd.f32 %v2129_v48, %v617_v63  ;;  %1444 = vmatprep.mubr.f32.mxu0 %v678_v60  ;;  %v681_v3 = vmax.f32 %v623_v62, 0.0 }
 0x22a   : > { %v1396_v1 = vpop.f32.mrf.mxu1  ;;  %1445 = vmatmul.mubr.f32.gmra.mxu0 %v679_v61 }
 0x22b   : > { %v680_v2 = vmax.f32 %v618_v0, 0.0  ;;  %1468 = vmatpush3.xpose.msra.mxu0 %v2034_v20  ;;  %v633_v4 = vadd.f32 %v1396_v1, %v2129_v48 }
 0x22c   : > { %v627_v5 = vpop.f32.mrf.mxu1  ;;  %1469 = vmatprep.subr.mxu0 %v2041_v23 }
 0x22d   : > { %v628_v18 = vadd.f32 %v2129_v48, %v627_v5  ;;  %1447 = vmatprep.mubr.f32.mxu0 %v680_v2  ;;  %v683_v8 = vmax.f32 %v633_v4, 0.0 }
 0x22e   : > { %v1399_v6 = vpop.f32.mrf.mxu1  ;;  %1448 = vmatmul.mubr.f32.gmra.mxu0 %v681_v3 }
 0x22f   : > { %v682_v7 = vmax.f32 %v628_v18, 0.0  ;;  %1470 = vmatpush3.xpose.msra.mxu0 %v2041_v23  ;;  %v643_v9 = vadd.f32 %v1399_v6, %v2129_v48 }
 0x230   : > { %v637_v10 = vpop.f32.mrf.mxu1  ;;  %1471 = vmatprep.subr.mxu0 %v2048_v26 }
 0x231   : > { %v638_v20 = vadd.f32 %v2129_v48, %v637_v10  ;;  %1450 = vmatprep.mubr.f32.mxu0 %v682_v7  ;;  %v685_v13 = vmax.f32 %v643_v9, 0.0 }
 0x232   : > { %v1402_v11 = vpop.f32.mrf.mxu1  ;;  %1451 = vmatmul.mubr.f32.gmra.mxu0 %v683_v8 }
 0x233   : > { %v684_v12 = vmax.f32 %v638_v20, 0.0  ;;  %1472 = vmatpush3.xpose.msra.mxu0 %v2048_v26  ;;  %v653_v14 = vadd.f32 %v1402_v11, %v2129_v48 }
 0x234   : > { %v647_v15 = vpop.f32.mrf.mxu1  ;;  %1473 = vmatprep.subr.mxu0 %v2054_v29 }
 0x235   : > { %v648_v23 = vadd.f32 %v2129_v48, %v647_v15  ;;  %1453 = vmatprep.mubr.f32.mxu0 %v684_v12  ;;  %v687_v19 = vmax.f32 %v653_v14, 0.0 }
 0x236   : > { %v1405_v16 = vpop.f32.mrf.mxu1  ;;  %1454 = vmatmul.mubr.f32.gmra.mxu0 %v685_v13 }
 0x237   : > { %v686_v17 = vmax.f32 %v648_v23, 0.0  ;;  %1474 = vmatpush3.xpose.msra.mxu0 %v2054_v29  ;;  %v663_v21 = vadd.f32 %v1405_v16, %v2129_v48 }
 0x238   : > { %v657_v22 = vpop.f32.mrf.mxu1  ;;  %1475 = vmatprep.subr.mxu0 %v2060_v32 }
 0x239   : > { %v658_v26 = vadd.f32 %v2129_v48, %v657_v22  ;;  %1456 = vmatprep.mubr.f32.mxu0 %v686_v17  ;;  %v689_v27 = vmax.f32 %v663_v21, 0.0 }
 0x23a   : > { %v1408_v24 = vpop.f32.mrf.mxu1  ;;  %1457 = vmatmul.mubr.f32.gmra.mxu0 %v687_v19 }
 0x23b   : > { %v688_v25 = vmax.f32 %v658_v26, 0.0  ;;  %1476 = vmatpush3.xpose.msra.mxu0 %v2060_v32  ;;  %v673_v28 = vadd.f32 %v1408_v24, %v2129_v48 }
 0x23c   : > { %v667_v30 = vpop.f32.mrf.mxu1  ;;  %1477 = vmatprep.subr.mxu0 %v2066_v35 }
 0x23d   : > { %v668_v29 = vadd.f32 %v2129_v48, %v667_v30  ;;  %1459 = vmatprep.mubr.f32.mxu0 %v688_v25  ;;  %v691_v33 = vmax.f32 %v673_v28, 0.0 }
 0x23e   : > { %1460 = vmatmul.mubr.f32.gmra.mxu0 %v689_v27 }
 0x23f   : > { %v690_v31 = vmax.f32 %v668_v29, 0.0  ;;  %1478 = vmatpush3.xpose.msra.mxu0 %v2066_v35 }
 0x240   : > { %1479 = vmatprep.subr.mxu0 %v2072_v38 }
 0x241   : > { %1462 = vmatprep.mubr.f32.mxu0 %v690_v31 }
 0x242   : > { %1463 = vmatmul.mubr.f32.gmra.mxu0 %v691_v33 }
 0x243   : > { %1480 = vmatpush3.xpose.msra.mxu0 %v2072_v38 }
 0x244   : > { %1481 = vmatprep.subr.mxu0 %v2077_v40 }
 0x247   : > { %1482 = vmatpush3.xpose.msra.mxu0 %v2077_v40 }
 0x248   : > { %1483 = vmatprep.subr.mxu0 %v2081_v41 }
 0x24b   : > { %1484 = vmatpush3.xpose.msra.mxu0 %v2081_v41 }
 0x24c   : > { %1485 = vmatprep.subr.mxu0 %v2085_v42 }
 0x24f   : > { %1486 = vmatpush3.xpose.msra.mxu0 %v2085_v42 }
 0x250   : > { %1487 = vmatprep.subr.mxu0 %v2089_v43 }
 0x253   : > { %1488 = vmatpush3.xpose.msra.mxu0 %v2089_v43 }
 0x254   : > { %1489 = vmatprep.subr.mxu0 %v2093_v44 }
 0x257   : > { %1490 = vmatpush3.xpose.msra.mxu0 %v2093_v44 }
 0x258   : > { %1491 = vmatprep.subr.mxu0 %v2097_v45 }
 0x25b   : > { %1492 = vmatpush3.xpose.msra.mxu0 %v2097_v45 }
 0x25c   : > { %1493 = vmatprep.subr.mxu0 %v2101_v46 }
 0x25f   : > { %1494 = vmatpush3.xpose.msra.mxu0 %v2101_v46 }
 0x260   : > { %1495 = vmatprep.subr.mxu0 %v2106_v47 }
 0x263   : > { %1496 = vmatpush3.xpose.msra.mxu0 %v2106_v47 }
 0x2e6   : > { %v1443_v32 = vpop.f32.mrf.mxu0 }
 0x2e8   : > { %v758_v35 = vpop.f32.mrf.mxu0 }
 0x2e9   : > { %1497 = vmatprep.mubr.f32.mxu0 %v758_v35 }
 0x2ea   : > { %v1446_v38 = vpop.f32.mrf.mxu0  ;;  %1498 = vmatmul.mubr.f32.vlgmr.msra.gmra.mxu0 %v1443_v32 }
 0x2ec   : > { %v768_v40 = vpop.f32.mrf.mxu0 }
 0x2ed   : > { %1500 = vmatprep.mubr.f32.mxu0 %v768_v40 }
 0x2ee   : > { %v1449_v41 = vpop.f32.mrf.mxu0  ;;  %1501 = vmatmul.mubr.f32.gmra.mxu0 %v1446_v38 }
 0x2f0   : > { %v778_v42 = vpop.f32.mrf.mxu0 }
 0x2f1   : > { %1503 = vmatprep.mubr.f32.mxu0 %v778_v42 }
 0x2f2   : > { %v1452_v43 = vpop.f32.mrf.mxu0  ;;  %1504 = vmatmul.mubr.f32.gmra.mxu0 %v1449_v41 }
 0x2f4   : > { %v788_v44 = vpop.f32.mrf.mxu0 }
 0x2f5   : > { %1506 = vmatprep.mubr.f32.mxu0 %v788_v44 }
 0x2f6   : > { %v1455_v45 = vpop.f32.mrf.mxu0  ;;  %1507 = vmatmul.mubr.f32.gmra.mxu0 %v1452_v43 }
 0x2f8   : > { %v798_v46 = vpop.f32.mrf.mxu0 }
 0x2f9   : > { %1509 = vmatprep.mubr.f32.mxu0 %v798_v46 }
 0x2fa   : > { %v1458_v47 = vpop.f32.mrf.mxu0  ;;  %1510 = vmatmul.mubr.f32.gmra.mxu0 %v1455_v45 }
 0x2fc   : > { %v808_v34 = vpop.f32.mrf.mxu0 }
 0x2fd   : > { %1512 = vmatprep.mubr.f32.mxu0 %v808_v34 }
 0x2fe   : > { %v1461_v36 = vpop.f32.mrf.mxu0  ;;  %1513 = vmatmul.mubr.f32.gmra.mxu0 %v1458_v47 }
 0x300   : > { %v818_v37 = vpop.f32.mrf.mxu0 }
 0x301   : > { %1515 = vmatprep.mubr.f32.mxu0 %v818_v37 }
 0x302   : > { %v1464_v39 = vpop.f32.mrf.mxu0  ;;  %1516 = vmatmul.mubr.f32.gmra.mxu0 %v1461_v36 }
 0x304   : > { %v828_v49 = vpop.f32.mrf.mxu0 }
 0x305   : > { %1518 = vmatprep.mubr.f32.mxu0 %v828_v49 }
 0x306   : > { %1519 = vmatmul.mubr.f32.gmra.mxu0 %v1464_v39 }
 0x3aa   : > { %v1499_v50 = vpop.f32.mrf.mxu0 }
 0x3ab   : > { %v909_v51 = vadd.f32 %v1499_v50, %v2129_v48 }
 0x3ac   : > { %v903_v52 = vpop.f32.mrf.mxu0 }
 0x3ad   : > { %v983_v53 = vmax.f32 %v909_v51, 0.0  ;;  %v904_v54 = vadd.f32 %v2129_v48, %v903_v52 }
 0x3ae   : > { %v1502_v55 = vpop.f32.mrf.mxu0 }
 0x3af   : > { %999 = vst [vmem:[%s2181_s11 + $0x8] sm:$0xff] %v983_v53  ;;  %v982_v56 = vmax.f32 %v904_v54, 0.0  ;;  %v919_v57 = vadd.f32 %v1502_v55, %v2129_v48 }
 0x3b0   : > { %v913_v58 = vpop.f32.mrf.mxu0 }
 0x3b1   : > { %998 = vst [vmem:[%s2181_s11] sm:$0xff] %v982_v56  ;;  %v985_v59 = vmax.f32 %v919_v57, 0.0  ;;  %v914_v60 = vadd.f32 %v2129_v48, %v913_v58 }
 0x3b2   : > { %v1505_v61 = vpop.f32.mrf.mxu0 }
 0x3b3   : > { %1001 = vst [vmem:[%s2181_s11 + $0x18] sm:$0xff] %v985_v59  ;;  %v984_v62 = vmax.f32 %v914_v60, 0.0  ;;  %v929_v63 = vadd.f32 %v1505_v61, %v2129_v48 }
 0x3b4   : > { %v923_v0 = vpop.f32.mrf.mxu0 }
 0x3b5   : > { %1000 = vst [vmem:[%s2181_s11 + $0x10] sm:$0xff] %v984_v62  ;;  %v987_v1 = vmax.f32 %v929_v63, 0.0  ;;  %v924_v2 = vadd.f32 %v2129_v48, %v923_v0 }
 0x3b6   : > { %v1508_v3 = vpop.f32.mrf.mxu0 }
 0x3b7   : > { %1003 = vst [vmem:[%s2181_s11 + $0x28] sm:$0xff] %v987_v1  ;;  %v986_v4 = vmax.f32 %v924_v2, 0.0  ;;  %v939_v5 = vadd.f32 %v1508_v3, %v2129_v48 }
 0x3b8   : > { %v933_v18 = vpop.f32.mrf.mxu0 }
 0x3b9   : > { %1002 = vst [vmem:[%s2181_s11 + $0x20] sm:$0xff] %v986_v4  ;;  %v989_v6 = vmax.f32 %v939_v5, 0.0  ;;  %v934_v7 = vadd.f32 %v2129_v48, %v933_v18 }
 0x3ba   : > { %v1511_v8 = vpop.f32.mrf.mxu0 }
 0x3bb   : > { %1005 = vst [vmem:[%s2181_s11 + $0x38] sm:$0xff] %v989_v6  ;;  %v988_v9 = vmax.f32 %v934_v7, 0.0  ;;  %v949_v10 = vadd.f32 %v1511_v8, %v2129_v48 }
 0x3bc   : > { %v943_v20 = vpop.f32.mrf.mxu0 }
 0x3bd   : > { %1004 = vst [vmem:[%s2181_s11 + $0x30] sm:$0xff] %v988_v9  ;;  %v991_v11 = vmax.f32 %v949_v10, 0.0  ;;  %v944_v12 = vadd.f32 %v2129_v48, %v943_v20 }
 0x3be   : > { %v1514_v13 = vpop.f32.mrf.mxu0 }
 0x3bf   : > { %1007 = vst [vmem:[%s2181_s11 + $0x48] sm:$0xff] %v991_v11  ;;  %v990_v14 = vmax.f32 %v944_v12, 0.0  ;;  %v959_v15 = vadd.f32 %v1514_v13, %v2129_v48 }
 0x3c0   : > { %v953_v23 = vpop.f32.mrf.mxu0 }
 0x3c1   : > { %1006 = vst [vmem:[%s2181_s11 + $0x40] sm:$0xff] %v990_v14  ;;  %v993_v16 = vmax.f32 %v959_v15, 0.0  ;;  %v954_v17 = vadd.f32 %v2129_v48, %v953_v23 }
 0x3c2   : > { %v1517_v19 = vpop.f32.mrf.mxu0 }
 0x3c3   : > { %1009 = vst [vmem:[%s2181_s11 + $0x58] sm:$0xff] %v993_v16  ;;  %v992_v21 = vmax.f32 %v954_v17, 0.0  ;;  %v969_v22 = vadd.f32 %v1517_v19, %v2129_v48 }
 0x3c4   : > { %v963_v26 = vpop.f32.mrf.mxu0 }
 0x3c5   : > { %1008 = vst [vmem:[%s2181_s11 + $0x50] sm:$0xff] %v992_v21  ;;  %v995_v24 = vmax.f32 %v969_v22, 0.0  ;;  %v964_v25 = vadd.f32 %v2129_v48, %v963_v26 }
 0x3c6   : > { %v1520_v27 = vpop.f32.mrf.mxu0 }
 0x3c7   : > { %1011 = vst [vmem:[%s2181_s11 + $0x68] sm:$0xff] %v995_v24  ;;  %v994_v28 = vmax.f32 %v964_v25, 0.0  ;;  %v979_v30 = vadd.f32 %v1520_v27, %v2129_v48 }
 0x3c8   : > { %v973_v29 = vpop.f32.mrf.mxu0 }
 0x3c9   : > { %1010 = vst [vmem:[%s2181_s11 + $0x60] sm:$0xff] %v994_v28  ;;  %v997_v31 = vmax.f32 %v979_v30, 0.0  ;;  %v974_v33 = vadd.f32 %v2129_v48, %v973_v29 }
 0x3cb   : > { %1013 = vst [vmem:[%s2181_s11 + $0x78] sm:$0xff] %v997_v31  ;;  %v996_v32 = vmax.f32 %v974_v33, 0.0 }
 0x3cd   : > { %1012 = vst [vmem:[%s2181_s11 + $0x70] sm:$0xff] %v996_v32 }
 0x3ce   : > { %1718 = shalt.err (!%p1715_p4)
}
 0x3cf   : > { %s1719_s28 = scalar_lea.hbm %s2216_s8, 2048  ;;  %s1723_s17 = scalar_lea.hbm %s2268_s5, 4096 }
 0x3d0   : > { %p1720_p5 = scmp.ne.s32.totalorder %s2216_s8, %s1719_s28  ;;  %p1724_p2 = scmp.lt.s32.totalorder %s2216_s8, %s2268_s5 }
 0x3d1   : > { %p1725_p6 = scmp.lt.s32.totalorder %s1723_s17, %s1719_s28 }
 0x3d2   : > { %p1721_p7 = pnand %p1720_p5, %p2293_p10 }
 0x3d3   : > { %p1726_p12 = por %p1725_p6, %p1724_p2 }
 0x3d4   : > { %p1722_p8 = pneg %p1721_p7 }
 0x3d6   : > { %p1727_p0 = pnand %p1726_p12, %p1722_p8 }
 0x3d8   : > { %1730 = shalt.err (!%p1727_p0)
}
 0x3d9   : > { %s1790_s9 = smov 128   ;;  %s1791_s11 = smov 8  }
 0x3da   : > { %1533 = dma.vmem_to_hbm [thread:$0]  (%p2293_p10), %s2218_s2, 2048, %s2216_s8, %s1015_s22, %s1790_s9, %s1790_s9, %s1791_s11  }
 0x3db PF: > { %s1043_s16 = sand.u32 1, %s1769_s18   ;;  %p2294_p3 = scmp.ne.s32.totalorder %s2279_s25, 0 }
 0x3dc   : > { %p2295_p11 = scmp.ge.s32.totalorder %s1781_s21, 2  ;;  %s1044_s29 = scalar_lea.sflag [#allocation4], %s1043_s16 }
 0x3de   : > { %p1550_p9 = pnand %p2295_p11, %p2294_p3 }
 0x3e0   : > { %p1551_p13 = pneg %p1550_p9 }
 0x3e2   : > { %1764 = dma.done.wait (%p1551_p13), %s1044_s29, 2048  }
 0x3e3   : > { %1766 = vsyncadd (%p1551_p13), %s1044_s29, 4294965248  ;;  %p22_p1 = scmp.ge.s32.totalorder %s1900_s15, 4   ;;  %s2296_s18 = smov %s1773_s19 }
 0x3e4   : > { %s2297_s19 = smov %s1777_s20  ;;  %s2298_s20 = smov %s1916_s27 }
 0x3e5   : > { %s2299_s21 = smov %s1900_s15  ;;  %24 = sbr.rel (!%p22_p1) target bundleno = 11 (0xb), region = 106 }
 0x3ea   :  { %1049 = vsyncpa [#allocation3], 1 }
 0x3eb   :  { %1051 = vsyncpa [#allocation3 + $0x1], 1 }
 0x3ec   :  { %1052 = vsyncpa [#allocation6], 1 }
 0x3ed   :  { %1054 = vsyncpa [#allocation6 + $0x1], 1 }
 0x3ee   :  { %1055 = vsyncpa [#allocation9], 1 }
 0x3ef   :  { %1056 = vsyncpa [#allocation4], 1 }
 0x3f0   :  { %1058 = vsyncpa [#allocation4 + $0x1], 1 }

</bundles_post_ra>
